<compile_context>
chip_gen: v7x
topology: tpu7x:2x2x1
jax: 0.10.0
libtpu: 0.0.40
codegen_flags: <defaults>
</compile_context>

<pallas_src>
import jax
import jax.numpy as jnp
from jax.experimental import pallas as pl
from jax.experimental.pallas import tpu as pltpu


def xor_net_kernel(p_ref, x_ref, o_ref):
    # p_ref: SMEM f32[9] = [w1_00, w1_01, w1_10, w1_11, b1_0, b1_1,
    #                       w2_00, w2_01, b2_0]
    # x_ref: VMEM (2, TR, C)  -- [0] = feature 0, [1] = feature 1, dense (TR, C) batch tile
    # o_ref: VMEM (TR, C)
    # Hoist scalar reads (and their scalar->vector splats) once per grid step.
    w1_00 = p_ref[0]
    w1_01 = p_ref[1]
    w1_10 = p_ref[2]
    w1_11 = p_ref[3]
    b1_0 = p_ref[4]
    b1_1 = p_ref[5]
    w2_0 = p_ref[6]
    w2_1 = p_ref[7]
    b2_0 = p_ref[8]

    x0 = x_ref[0]                            # (TR, C), full vregs
    x1 = x_ref[1]                            # (TR, C)

    # hidden = relu(x @ W1.T + b1) -> per output neuron j: x0*W1[j,0] + x1*W1[j,1] + b1[j]
    h0 = jnp.maximum(x0 * w1_00 + x1 * w1_01 + b1_0, 0.0)
    h1 = jnp.maximum(x0 * w1_10 + x1 * w1_11 + b1_1, 0.0)

    # out = sigmoid(h @ W2.T + b2); exp + approx recip both issue on the EUP slot.
    z = h0 * w2_0 + h1 * w2_1 + b2_0
    o_ref[...] = pl.reciprocal(1.0 + jnp.exp(-z), approx=True)


def xor_net_forward(x, w1, b1, w2, b2, *, lanes=512, max_tile_rows=1024):
    """x: (B, 2) f32 -> (B, 1) f32, matching XOR_Net.forward semantics.

    Weights keep the PyTorch nn.Linear convention: W1 (2, 2), b1 (2,),
    W2 (1, 2), b2 (1,).
    """
    assert lanes % 128 == 0 and max_tile_rows % 8 == 0
    B = x.shape[0]

    # Reshape the batch into a dense 2D grid of (rows, lanes) and clamp the
    # row-tile to the (padded) batch so small batches stay small.
    n_rows = -(-B // lanes)                  # rows needed at `lanes` width
    n_rows = -(-n_rows // 8) * 8             # sublane multiple (8)
    tile_rows = min(max_tile_rows, n_rows)   # clamp tile to batch
    n_tiles = -(-n_rows // tile_rows)
    rows_pad = n_tiles * tile_rows
    b_pad = rows_pad * lanes

    # Dense layout: features on the leading (untiled) axis, batch as (rows, lanes).
    xt = jnp.pad(x.astype(jnp.float32).T, ((0, 0), (0, b_pad - B)))    # (2, b_pad)
    x_blk = xt.reshape(2, rows_pad, lanes)                             # (2, R, C)

    # All parameters flattened into one 1-D f32[9] array -> lives in SMEM.
    params = jnp.concatenate(
        [w1.reshape(-1), b1.reshape(-1), w2.reshape(-1), b2.reshape(-1)]
    ).astype(jnp.float32)                                              # (9,)

    out = pl.pallas_call(
        xor_net_kernel,
        out_shape=jax.ShapeDtypeStruct((rows_pad, lanes), jnp.float32),
        grid=(n_tiles,),
        in_specs=[
            # 9 scalars in SMEM (kept 1-D: 2-D SMEM would pad to [8,128] words).
            pl.BlockSpec(memory_space=pltpu.MemorySpace.SMEM),
            # x tiled along the batch-row axis; each block is fully (8,128)-dense.
            pl.BlockSpec((2, tile_rows, lanes), lambda i: (0, i, 0)),
        ],
        out_specs=pl.BlockSpec((tile_rows, lanes), lambda i: (i, 0)),
        compiler_params=pltpu.CompilerParams(
            dimension_semantics=("parallel",),   # shard batch tiles across TCs on v7x
            vmem_limit_bytes=32 << 20,           # ~12 MiB double-buffered working set
        ),
    )(params, x_blk)

    # (R, C) is contiguous in batch order -> flatten + slice off padding.
    return out.reshape(-1)[:B].reshape(B, 1)


def reference_forward(x, w1, b1, w2, b2):
    h = jnp.maximum(x @ w1.T + b1, 0.0)
    return jax.nn.sigmoid(h @ w2.T + b2)


if __name__ == "__main__":
    key = jax.random.PRNGKey(0)
    kx, k1, kb1, k2, kb2 = jax.random.split(key, 5)

    # XOR truth-table inputs (batch of 4) plus a small perturbation.
    x = jnp.array([[0.0, 0.0], [0.0, 1.0], [1.0, 0.0], [1.0, 1.0]],
                  dtype=jnp.float32)
    x = x + 0.01 * jax.random.normal(kx, x.shape, dtype=jnp.float32)

    # Deterministic params (PyTorch Linear shapes: (out, in), (out,)).
    w1 = jax.random.normal(k1, (2, 2), dtype=jnp.float32) * 0.5
    b1 = jax.random.normal(kb1, (2,), dtype=jnp.float32) * 0.5
    w2 = jax.random.normal(k2, (1, 2), dtype=jnp.float32) * 0.5
    b2 = jax.random.normal(kb2, (1,), dtype=jnp.float32) * 0.5

    # Tolerance loosened for approx=True reciprocal in the sigmoid (~1e-3 rel).
    TOL = 2e-3

    # Small XOR batch (clamped to a single minimal (8, 512) tile).
    y = jax.block_until_ready(xor_net_forward(x, w1, b1, w2, b2))
    y_ref = reference_forward(x, w1, b1, w2, b2)
    assert y.shape == (4, 1)
    assert jnp.allclose(y, y_ref, atol=TOL, rtol=TOL)

    # Larger ragged batch to exercise the padding path.
    xb = jax.random.normal(kx, (1029, 2), dtype=jnp.float32)
    yb = jax.block_until_ready(xor_net_forward(xb, w1, b1, w2, b2))
    yb_ref = reference_forward(xb, w1, b1, w2, b2)
    assert yb.shape == (1029, 1)
    assert jnp.allclose(yb, yb_ref, atol=TOL, rtol=TOL)

    # Force the multi-tile grid path with small overrides (5 tiles of (8, 128)).
    xc = jax.random.normal(k1, (5000, 2), dtype=jnp.float32)
    yc = jax.block_until_ready(
        xor_net_forward(xc, w1, b1, w2, b2, lanes=128, max_tile_rows=8))
    yc_ref = reference_forward(xc, w1, b1, w2, b2)
    assert yc.shape == (5000, 1)
    assert jnp.allclose(yc, yc_ref, atol=TOL, rtol=TOL)

    print("KERNEL_OK")
</pallas_src>

<mosaic_0001>
module attributes {stable_mosaic.version = 11 : i64} {
  func.func @xor_net_kernel(%arg0: i32, %arg1: memref<9xf32, #tpu.memory_space<smem>>, %arg2: memref<2x8x512xf32, #tpu.memory_space<vmem>>, %arg3: memref<8x512xf32, #tpu.memory_space<vmem>>) attributes {dimension_semantics = [#tpu.dimension_semantics<parallel>], iteration_bounds = array<i64: 1>, scalar_prefetch = 0 : i64, scratch_operands = 0 : i64, tpu.core_type = #tpu.core_type<tc>, window_params = [{transform_indices = @transform_0, window_bounds = array<i64: 9>}, {transform_indices = @transform_1, window_bounds = array<i64: 2, 8, 512>}, {transform_indices = @transform_2, window_bounds = array<i64: 8, 512>}]} {
    %c0 = arith.constant 0 : index
    %0 = memref.load %arg1[%c0] : memref<9xf32, #tpu.memory_space<smem>>
    %c1 = arith.constant 1 : index
    %1 = memref.load %arg1[%c1] : memref<9xf32, #tpu.memory_space<smem>>
    %c2 = arith.constant 2 : index
    %2 = memref.load %arg1[%c2] : memref<9xf32, #tpu.memory_space<smem>>
    %c3 = arith.constant 3 : index
    %3 = memref.load %arg1[%c3] : memref<9xf32, #tpu.memory_space<smem>>
    %c4 = arith.constant 4 : index
    %4 = memref.load %arg1[%c4] : memref<9xf32, #tpu.memory_space<smem>>
    %c5 = arith.constant 5 : index
    %5 = memref.load %arg1[%c5] : memref<9xf32, #tpu.memory_space<smem>>
    %c6 = arith.constant 6 : index
    %6 = memref.load %arg1[%c6] : memref<9xf32, #tpu.memory_space<smem>>
    %c7 = arith.constant 7 : index
    %7 = memref.load %arg1[%c7] : memref<9xf32, #tpu.memory_space<smem>>
    %c8 = arith.constant 8 : index
    %8 = memref.load %arg1[%c8] : memref<9xf32, #tpu.memory_space<smem>>
    %c0_0 = arith.constant 0 : index
    %c0_1 = arith.constant 0 : index
    %c0_2 = arith.constant 0 : index
    %9 = vector.load %arg2[%c0_0, %c0_1, %c0_2] : memref<2x8x512xf32, #tpu.memory_space<vmem>>, vector<1x8x512xf32>
    %10 = vector.shape_cast %9 : vector<1x8x512xf32> to vector<8x512xf32>
    %c1_3 = arith.constant 1 : index
    %c0_4 = arith.constant 0 : index
    %c0_5 = arith.constant 0 : index
    %11 = vector.load %arg2[%c1_3, %c0_4, %c0_5] : memref<2x8x512xf32, #tpu.memory_space<vmem>>, vector<1x8x512xf32>
    %12 = vector.shape_cast %11 : vector<1x8x512xf32> to vector<8x512xf32>
    %13 = vector.broadcast %0 : f32 to vector<8x512xf32>
    %14 = arith.mulf %10, %13 : vector<8x512xf32>
    %15 = vector.broadcast %1 : f32 to vector<8x512xf32>
    %16 = arith.mulf %12, %15 : vector<8x512xf32>
    %17 = arith.addf %14, %16 : vector<8x512xf32>
    %18 = vector.broadcast %4 : f32 to vector<8x512xf32>
    %19 = arith.addf %17, %18 : vector<8x512xf32>
    %cst = arith.constant 0.000000e+00 : f32
    %20 = vector.broadcast %cst : f32 to vector<8x512xf32>
    %21 = arith.maximumf %19, %20 : vector<8x512xf32>
    %22 = vector.broadcast %2 : f32 to vector<8x512xf32>
    %23 = arith.mulf %10, %22 : vector<8x512xf32>
    %24 = vector.broadcast %3 : f32 to vector<8x512xf32>
    %25 = arith.mulf %12, %24 : vector<8x512xf32>
    %26 = arith.addf %23, %25 : vector<8x512xf32>
    %27 = vector.broadcast %5 : f32 to vector<8x512xf32>
    %28 = arith.addf %26, %27 : vector<8x512xf32>
    %cst_6 = arith.constant 0.000000e+00 : f32
    %29 = vector.broadcast %cst_6 : f32 to vector<8x512xf32>
    %30 = arith.maximumf %28, %29 : vector<8x512xf32>
    %31 = vector.broadcast %6 : f32 to vector<8x512xf32>
    %32 = arith.mulf %21, %31 : vector<8x512xf32>
    %33 = vector.broadcast %7 : f32 to vector<8x512xf32>
    %34 = arith.mulf %30, %33 : vector<8x512xf32>
    %35 = arith.addf %32, %34 : vector<8x512xf32>
    %36 = vector.broadcast %8 : f32 to vector<8x512xf32>
    %37 = arith.addf %35, %36 : vector<8x512xf32>
    %cst_7 = arith.constant 0.000000e+00 : f32
    %38 = vector.broadcast %cst_7 : f32 to vector<8x512xf32>
    %39 = arith.subf %38, %37 : vector<8x512xf32>
    %40 = math.exp %39 : vector<8x512xf32>
    %cst_8 = arith.constant 1.000000e+00 : f32
    %41 = vector.broadcast %cst_8 : f32 to vector<8x512xf32>
    %42 = arith.addf %41, %40 : vector<8x512xf32>
    %43 = tpu.reciprocal %42 {approx = true} : vector<8x512xf32> -> vector<8x512xf32>
    %c0_9 = arith.constant 0 : index
    %c0_10 = arith.constant 0 : index
    %44 = vector.load %arg3[%c0_9, %c0_10] : memref<8x512xf32, #tpu.memory_space<vmem>>, vector<8x512xf32>
    tpu.vector_store %arg3[%c0_9, %c0_10], %43 {strides = array<i32>} : memref<8x512xf32, #tpu.memory_space<vmem>>, vector<8x512xf32>,
    return
  }
  func.func @transform_0(%arg0: i32) -> i32 {
    %c0_i32 = arith.constant 0 : i32
    %c0_i32_0 = arith.constant 0 : i32
    return %c0_i32 : i32
  }
  func.func @transform_1(%arg0: i32) -> (i32, i32, i32) {
    %c0_i32 = arith.constant 0 : i32
    %c0_i32_0 = arith.constant 0 : i32
    %c0_i32_1 = arith.constant 0 : i32
    return %c0_i32, %arg0, %c0_i32_0 : i32, i32, i32
  }
  func.func @transform_2(%arg0: i32) -> (i32, i32) {
    %c0_i32 = arith.constant 0 : i32
    %c0_i32_0 = arith.constant 0 : i32
    return %arg0, %c0_i32 : i32, i32
  }
}

</mosaic_0001>

<bundles_post_ra>
// kernel: tpu_custom_call.1
= control target key start
LH: loop header
LB: loop body
LE: loop exit
PB: predicated region body
PF: predicated region fallthrough
CT: control target
= control target key end

     0   :  { %7 = vsyncpa [#allocation5], 0  ;;  %s308_s0 = inlined_call_operand.hbm [shape: f32[9], index: 0, kind: input, shape index: {}]   ;;  %s309_s1 = inlined_call_operand.hbm [shape: f32[2,8,512], index: 1, kind: input, shape index: {}]   ;;  %s310_s2 = inlined_call_operand.hbm [shape: f32[8,512], index: 2, kind: output, shape index: {}]  }
   0x1   :  { %8 = vsyncpa [#allocation3], 0 }
   0x2   :  { %9 = vsyncpa [#allocation4], 0  ;;  %s189_s11 = scalar_lea.hbm %s308_s0, 16 }
   0x3   :  { %p190_p0 = scmp.ne.s32.totalorder %s308_s0, %s189_s11  ;;  %p193_p1 = scmp.lt.u32.totalorder %s189_s11, %s308_s0 }
   0x5   :  { %p195_p2 = pnand %p193_p1, %p190_p0 }
   0x7   :  { %198 = shalt.err (!%p195_p2)
}
   0x8   :  { %s249_s16 = smov [#allocation2]   ;;  %s250_s19 = smov [#allocation6]  }
   0x9   :  { %17 = dma.hbm_to_smem %s308_s0, 16, %s249_s16, [#allocation5]  }
   0xa   :  { %s23_s20 = sshll.u32 %s250_s19, 4  ;;  %s199_s23 = scalar_lea.hbm %s309_s1, 1024  ;;  %s24_s20 = int_to_ptr.vmem [resolvable:$true] %s23_s20 }
   0xb   :  { %p200_p3 = scmp.ne.s32.totalorder %s309_s1, %s199_s23  ;;  %p203_p4 = scmp.lt.u32.totalorder %s199_s23, %s309_s1 }
   0xd   :  { %p205_p5 = pnand %p203_p4, %p200_p3 }
   0xf   :  { %208 = shalt.err (!%p205_p5)
}
  0x10   :  { %s209_s28 = scalar_lea.vmem %s24_s20, 1024  ;;  %p214_p7 = scmp.lt.s32.totalorder %s24_s20, %s24_s20 }
  0x11   :  { %p210_p6 = scmp.ne.s32.totalorder %s24_s20, %s209_s28  ;;  %p215_p8 = scmp.lt.s32.totalorder %s209_s28, %s209_s28 }
  0x13   :  { %p216_p9 = por %p215_p8, %p214_p7 }
  0x15   :  { %p217_p10 = pnand %p216_p9, %p210_p6 }
  0x17   :  { %220 = shalt.err (!%p217_p10)
}
  0x18   :  { %s251_s0 = smov 512   ;;  %s252_s29 = smov 32  }
  0x19   :  { %29 = dma.hbm_to_vmem [thread:$0]  %s309_s1, 1024, %s24_s20, [#allocation3], %s251_s0, %s251_s0, %s252_s29  }
  0x1a   :  { %243 = dma.done.wait [#allocation5], 16  }
  0x1b   :  { %244 = vsyncadd [#allocation5], 4294967280 }
  0x1c   :  { %245 = dma.done.wait [#allocation3], 1024  }
  0x1d   :  { %246 = vsyncadd [#allocation3], 4294966272 }
  0x1e   :  { %36 = sfence }
  0x1f   :  { %s37_s4 = sld [smem:[#allocation2]]  ;;  %s160_s5 = sld [smem:[#allocation2 + $0x1]]  ;;  %v46_v0 = vld [vmem:[#allocation6] sm:$0xff]  ;;  %v47_v4 = vld [vmem:[#allocation6 + $0x8] sm:$0xff]  ;;  %v48_v13 = vld [vmem:[#allocation6 + $0x10] sm:$0xff] }
  0x20   :  { %s161_s6 = sld [smem:[#allocation2 + $0x2]]  ;;  %s162_s7 = sld [smem:[#allocation2 + $0x3]]  ;;  %v51_v1 = vld [vmem:[#allocation6 + $0x20] sm:$0xff]  ;;  %v52_v9 = vld [vmem:[#allocation6 + $0x28] sm:$0xff]  ;;  %v53_v14 = vld [vmem:[#allocation6 + $0x30] sm:$0xff] }
  0x21   :  { %s163_s8 = sld [smem:[#allocation2 + $0x4]]  ;;  %s164_s9 = sld [smem:[#allocation2 + $0x5]]  ;;  %v49_v23 = vld [vmem:[#allocation6 + $0x18] sm:$0xff] }
  0x22   :  { %s165_s10 = sld [smem:[#allocation2 + $0x6]]  ;;  %s166_s11 = sld [smem:[#allocation2 + $0x7]]  ;;  %v54_v28 = vld [vmem:[#allocation6 + $0x38] sm:$0xff] }
  0x23   :  { %s293_s1 = sld [smem:[#allocation2 + $0x8]]  ;;  %s253_s12 = smov [#allocation7]  }
  0x24   :  { %s150_s13 = sshll.u32 %s253_s12, 4  ;;  %s151_s13 = int_to_ptr.vmem [resolvable:$true] %s150_s13 }
  0x25   :  { %v55_v2 = vstv %s37_s4  ;;  %v60_v3 = vstv %s160_s5  ;;  %s221_s14 = scalar_lea.vmem %s151_s13, 512  ;;  %p226_p12 = scmp.lt.s32.totalorder %s151_s13, %s151_s13 }
  0x26   :  { %v56_v5 = vmul.f32 %v55_v2, %v46_v0  ;;  %v61_v6 = vmul.f32 %v60_v3, %v51_v1  ;;  %v78_v7 = vstv %s161_s6  ;;  %v83_v8 = vstv %s162_s7  ;;  %p222_p11 = scmp.ne.s32.totalorder %s151_s13, %s221_s14  ;;  %p227_p13 = scmp.lt.s32.totalorder %s221_s14, %s221_s14 }
  0x27   :  { %v69_v10 = vstv %s163_s8  ;;  %v79_v11 = vmul.f32 %v78_v7, %v46_v0  ;;  %v84_v12 = vmul.f32 %v83_v8, %v51_v1  ;;  %v92_v16 = vstv %s164_s9 }
  0x28   :  { %v65_v15 = vadd.f32 %v61_v6, %v56_v5  ;;  %v101_v17 = vstv %s165_s10  ;;  %v57_v18 = vmul.f32 %v55_v2, %v47_v4  ;;  %v106_v20 = vstv %s166_s11  ;;  %p228_p0 = por %p227_p13, %p226_p12 }
  0x29   :  { %v88_v19 = vadd.f32 %v84_v12, %v79_v11  ;;  %v62_v21 = vmul.f32 %v60_v3, %v52_v9  ;;  %v80_v22 = vmul.f32 %v78_v7, %v47_v4  ;;  %v85_v25 = vmul.f32 %v83_v8, %v52_v9 }
  0x2a   :  { %v70_v24 = vadd.f32 %v69_v10, %v65_v15  ;;  %v58_v26 = vmul.f32 %v55_v2, %v48_v13  ;;  %v63_v27 = vmul.f32 %v60_v3, %v53_v14  ;;  %v81_v31 = vmul.f32 %v78_v7, %v48_v13  ;;  %p229_p1 = pnand %p228_p0, %p222_p11 }
  0x2b   :  { %v93_v29 = vadd.f32 %v92_v16, %v88_v19  ;;  %v66_v30 = vadd.f32 %v62_v21, %v57_v18  ;;  %v86_v32 = vmul.f32 %v83_v8, %v53_v14  ;;  %v89_v34 = vadd.f32 %v85_v25, %v80_v22 }
  0x2c   :  { %v74_v33 = vmax.f32 %v70_v24, 0.0  ;;  %v67_v35 = vadd.f32 %v63_v27, %v58_v26  ;;  %v59_v36 = vmul.f32 %v55_v2, %v49_v23  ;;  %v64_v40 = vmul.f32 %v60_v3, %v54_v28 }
  0x2d   :  { %v97_v37 = vmax.f32 %v93_v29, 0.0  ;;  %v71_v38 = vadd.f32 %v69_v10, %v66_v30  ;;  %v90_v39 = vadd.f32 %v86_v32, %v81_v31  ;;  %v94_v42 = vadd.f32 %v92_v16, %v89_v34 }
  0x2e   :  { %v102_v41 = vmul.f32 %v101_v17, %v74_v33  ;;  %v72_v43 = vadd.f32 %v69_v10, %v67_v35  ;;  %v82_v44 = vmul.f32 %v78_v7, %v49_v23  ;;  %v68_v48 = vadd.f32 %v64_v40, %v59_v36 }
  0x2f   :  { %v107_v45 = vmul.f32 %v106_v20, %v97_v37  ;;  %v75_v46 = vmax.f32 %v71_v38, 0.0  ;;  %v95_v47 = vadd.f32 %v92_v16, %v90_v39  ;;  %v115_v49 = vstv %s293_s1 }
  0x30   :  { %v98_v50 = vmax.f32 %v94_v42, 0.0  ;;  %v76_v51 = vmax.f32 %v72_v43, 0.0  ;;  %v87_v52 = vmul.f32 %v83_v8, %v54_v28  ;;  %v73_v56 = vadd.f32 %v69_v10, %v68_v48 }
  0x31   :  { %v111_v53 = vadd.f32 %v107_v45, %v102_v41  ;;  %v103_v54 = vmul.f32 %v101_v17, %v75_v46  ;;  %v99_v55 = vmax.f32 %v95_v47, 0.0 }
  0x32   :  { %v108_v57 = vmul.f32 %v106_v20, %v98_v50  ;;  %v104_v58 = vmul.f32 %v101_v17, %v76_v51  ;;  %v91_v59 = vadd.f32 %v87_v52, %v82_v44  ;;  %v77_v62 = vmax.f32 %v73_v56, 0.0 }
  0x33   :  { %v116_v60 = vadd.f32 %v115_v49, %v111_v53  ;;  %v109_v61 = vmul.f32 %v106_v20, %v99_v55 }
  0x34   :  { %v112_v63 = vadd.f32 %v108_v57, %v103_v54  ;;  %v96_v0 = vadd.f32 %v92_v16, %v91_v59  ;;  %v105_v5 = vmul.f32 %v101_v17, %v77_v62 }
  0x35   :  { %v120_v1 = vsub.f32 0.0, %v116_v60  ;;  %v113_v2 = vadd.f32 %v109_v61, %v104_v58 }
  0x36   :  { %v117_v3 = vadd.f32 %v115_v49, %v112_v63  ;;  %v100_v4 = vmax.f32 %v96_v0, 0.0 }
  0x37   :  { %v124_v6 = vmul.f32 1.442695, %v120_v1  ;;  %v118_v7 = vadd.f32 %v115_v49, %v113_v2 }
  0x38   :  { %v121_v8 = vsub.f32 0.0, %v117_v3  ;;  %v110_v9 = vmul.f32 %v106_v20, %v100_v4 }
  0x39   :  { %173 = vpow2.f32 %v124_v6  ;;  %v122_v11 = vsub.f32 0.0, %v118_v7 }
  0x3a   :  { %v126_v10 = vmul.f32 1.442695, %v121_v8  ;;  %v114_v12 = vadd.f32 %v110_v9, %v105_v5 }
  0x3b   :  { %v128_v13 = vmul.f32 1.442695, %v122_v11 }
  0x3c   :  { %175 = vpow2.f32 %v126_v10  ;;  %v119_v14 = vadd.f32 %v115_v49, %v114_v12 }
  0x3d   :  { %177 = vpow2.f32 %v128_v13 }
  0x3e   :  { %v123_v15 = vsub.f32 0.0, %v119_v14 }
  0x40   :  { %v130_v18 = vmul.f32 1.442695, %v123_v15 }
  0x42   :  { %179 = vpow2.f32 %v130_v18 }
  0x43   :  { %v174_v16 = vpop.eup %173 }
  0x44   :  { %v132_v19 = vadd.f32 1.0, %v174_v16 }
  0x46   :  { %v176_v21 = vpop.eup %175  ;;  %181 = vrcp.f32 %v132_v19 }
  0x47   :  { %v178_v17 = vpop.eup %177  ;;  %v133_v22 = vadd.f32 1.0, %v176_v21 }
  0x48   :  { %v134_v23 = vadd.f32 1.0, %v178_v17 }
  0x49   :  { %183 = vrcp.f32 %v133_v22 }
  0x4a   :  { %185 = vrcp.f32 %v134_v23 }
  0x4c   :  { %v180_v20 = vpop.eup %179 }
  0x4d   :  { %v135_v24 = vadd.f32 1.0, %v180_v20 }
  0x4f   :  { %187 = vrcp.f32 %v135_v24 }
  0x50   :  { %v182_v25 = vpop.eup %181 }
  0x51   :  { %140 = vst [vmem:[#allocation7] sm:$0xff] %v182_v25 }
  0x53   :  { %v184_v26 = vpop.eup %183 }
  0x54   :  { %v186_v27 = vpop.eup %185  ;;  %141 = vst [vmem:[#allocation7 + $0x8] sm:$0xff] %v184_v26 }
  0x55   :  { %142 = vst [vmem:[#allocation7 + $0x10] sm:$0xff] %v186_v27 }
  0x59   :  { %v188_v28 = vpop.eup %187 }
  0x5a   :  { %143 = vst [vmem:[#allocation7 + $0x18] sm:$0xff] %v188_v28 }
  0x5b   :  { %232 = shalt.err (!%p229_p1)
}
  0x5c   :  { %s233_s17 = scalar_lea.hbm %s310_s2, 512 }
  0x5d   :  { %p234_p2 = scmp.ne.s32.totalorder %s310_s2, %s233_s17  ;;  %p237_p3 = scmp.lt.u32.totalorder %s233_s17, %s310_s2 }
  0x5f   :  { %p239_p4 = pnand %p237_p3, %p234_p2 }
  0x61   :  { %242 = shalt.err (!%p239_p4)
}
  0x62   :  { %153 = dma.vmem_to_hbm [thread:$0]  %s151_s13, 512, %s310_s2, [#allocation4]  }
  0x63   :  { %247 = dma.done.wait [#allocation4], 512  }
  0x64   :  { %248 = vsyncadd [#allocation4], 4294966784 }
  0x65   :  { %157 = vsyncpa [#allocation3], 1 }
  0x66   :  { %158 = vsyncpa [#allocation4], 1 }
  0x67   :  { %159 = vsyncpa [#allocation5], 1 }

</bundles_post_ra>
